<compile_context>
chip_gen: v6e
topology: v6e:2x2x1
jax: 0.10.0
libtpu: 0.0.40
codegen_flags: <defaults>
</compile_context>

<pallas_src>
import jax
import jax.numpy as jnp
from jax.experimental import pallas as pl
from jax.experimental.pallas import tpu as pltpu


_TARGET_BLOCK_BYTES = 4 * 1024 * 1024   # ~4 MiB per block (per pipeline buffer)
_VMEM_LIMIT_BYTES = 32 * 1024 * 1024    # explicit: raises v5e's 16 MiB default


def _elu_plus_one_kernel(x_ref, o_ref):
    x = x_ref[...].astype(jnp.float32)
    # elu(x) + 1  ==  x + 1   for x > 0
    #             ==  exp(x)  for x <= 0
    o_ref[...] = jnp.where(x > 0, x + 1.0, jnp.exp(x)).astype(o_ref.dtype)


def _cdiv(a, b):
    return -(-a // b)


def _round_up(n, m):
    return ((n + m - 1) // m) * m


def _sublane(dtype):
    # Native sublane tile: 8 for 32-bit, 16 for bf16/f16, 32 for int8/fp8.
    return max(8, 32 // jnp.dtype(dtype).itemsize)


def activation_feature_map(x):
    """ActivationFunctionFeatureMap.forward(x) with activation = elu(x) + 1."""
    orig_shape = x.shape
    dtype = x.dtype
    if x.size == 0:
        return x

    itemsize = jnp.dtype(dtype).itemsize
    sublane = _sublane(dtype)

    # --- Layout-preserving 2D/3D view (no relayout copies around the kernel) ---
    if x.ndim >= 2 and orig_shape[-1] % 128 == 0 and orig_shape[-2] % sublane == 0:
        # Fold of second-minor into rows preserves the (sublane,128) tiling.
        x_view = x.reshape(-1, orig_shape[-1])
    elif x.ndim >= 3:
        # Keep the minor two dims intact; folding leading dims is always free.
        x_view = x.reshape(-1, orig_shape[-2], orig_shape[-1])
    elif x.ndim == 2:
        x_view = x.reshape(1, *orig_shape)
    else:  # 0-D / 1-D
        x_view = x.reshape(1, 1, -1)

    rows = x_view.shape[0]
    minor_dims = x_view.shape[1:]
    lane_aligned = len(minor_dims) == 1

    # Physical (tile-padded) bytes of one row: what a VMEM block actually costs.
    if lane_aligned:
        row_bytes = minor_dims[0] * itemsize
        row_align = sublane            # block's second-minor must be sublane-multiple
    else:
        row_bytes = (_round_up(minor_dims[0], sublane)
                     * _round_up(minor_dims[1], 128) * itemsize)
        row_align = 1                  # leading dim of a 3D block: no constraint

    # TODO(synk): if a single row ever exceeds the byte target (minor dim of
    # millions of elements) the lane dim should be tiled too; not needed for
    # realistic feature-map shapes.
    target_rows = _round_up(max(1, _TARGET_BLOCK_BYTES // row_bytes), row_align)

    if rows <= row_align:
        block_rows = rows              # full extent (exempt from divisibility rules)
    elif rows <= target_rows:
        # Split into >= 2 blocks so both v7x TensorCores get work.
        block_rows = _round_up(_cdiv(rows, 2), row_align)
        if block_rows >= rows:
            block_rows = rows
    else:
        block_rows = target_rows

    grid = (_cdiv(rows, block_rows),)
    block_shape = (block_rows,) + minor_dims
    zeros = (0,) * len(minor_dims)
    index_map = lambda i: (i,) + zeros

    n = x.size
    out_view = pl.pallas_call(
        _elu_plus_one_kernel,
        out_shape=jax.ShapeDtypeStruct(x_view.shape, dtype),
        grid_spec=pltpu.PrefetchScalarGridSpec(
            num_scalar_prefetch=0,
            grid=grid,
            in_specs=[pl.BlockSpec(block_shape, index_map)],
            out_specs=pl.BlockSpec(block_shape, index_map),
        ),
        compiler_params=pltpu.CompilerParams(
            dimension_semantics=("parallel",),   # shards grid across v7x's 2 TCs
            vmem_limit_bytes=_VMEM_LIMIT_BYTES,
        ),
        cost_estimate=pl.CostEstimate(
            flops=2 * n,
            transcendentals=n,
            bytes_accessed=2 * n * itemsize,
        ),
    )(x_view)

    return out_view.reshape(orig_shape)


def _reference(x):
    xf = x.astype(jnp.float32)
    elu = jnp.where(xf > 0, xf, jnp.expm1(xf))
    return (elu + 1.0).astype(x.dtype)


if __name__ == "__main__":
    key = jax.random.PRNGKey(0)

    # fast_transformers Q/K layout: [batch, seq_len, heads, query_dims].
    # query_dims=32 -> exercises the natural-shape (no-relayout) path.
    x1 = jax.random.normal(jax.random.fold_in(key, 0), (2, 8, 4, 32),
                           dtype=jnp.float32)
    # Lane-aligned case -> exercises the folded lane-dense path + 2-block split.
    x2 = jax.random.normal(jax.random.fold_in(key, 1), (4, 16, 256),
                           dtype=jnp.float32)

    for x in (x1, x2):
        out = jax.block_until_ready(activation_feature_map(x))
        ref = _reference(x)
        assert out.shape == x.shape and out.dtype == x.dtype
        assert jnp.allclose(out, ref, atol=1e-5, rtol=1e-5), "mismatch vs reference"

    print("KERNEL_OK")
</pallas_src>

<mosaic_0001>
module attributes {stable_mosaic.version = 11 : i64} {
  func.func @_elu_plus_one_kernel(%arg0: i32, %arg1: memref<8x4x32xf32, #tpu.memory_space<vmem>>, %arg2: memref<8x4x32xf32, #tpu.memory_space<vmem>>) attributes {dimension_semantics = [#tpu.dimension_semantics<parallel>], iteration_bounds = array<i64: 2>, scalar_prefetch = 0 : i64, scratch_operands = 0 : i64, tpu.core_type = #tpu.core_type<tc>, window_params = [{transform_indices = @transform_0, window_bounds = array<i64: 8, 4, 32>}, {transform_indices = @transform_1, window_bounds = array<i64: 8, 4, 32>}]} {
    %c0 = arith.constant 0 : index
    %c0_0 = arith.constant 0 : index
    %c0_1 = arith.constant 0 : index
    %0 = vector.load %arg1[%c0, %c0_0, %c0_1] : memref<8x4x32xf32, #tpu.memory_space<vmem>>, vector<8x4x32xf32>
    %cst = arith.constant 0.000000e+00 : f32
    %1 = vector.broadcast %cst : f32 to vector<8x4x32xf32>
    %2 = arith.cmpf ogt, %0, %1 : vector<8x4x32xf32>
    %cst_2 = arith.constant 1.000000e+00 : f32
    %3 = vector.broadcast %cst_2 : f32 to vector<8x4x32xf32>
    %4 = arith.addf %0, %3 : vector<8x4x32xf32>
    %5 = math.exp %0 : vector<8x4x32xf32>
    %6 = arith.select %2, %4, %5 : vector<8x4x32xi1>, vector<8x4x32xf32>
    %c0_3 = arith.constant 0 : index
    %c0_4 = arith.constant 0 : index
    %c0_5 = arith.constant 0 : index
    %7 = vector.load %arg2[%c0_3, %c0_4, %c0_5] : memref<8x4x32xf32, #tpu.memory_space<vmem>>, vector<8x4x32xf32>
    tpu.vector_store %arg2[%c0_3, %c0_4, %c0_5], %6 {strides = array<i32>} : memref<8x4x32xf32, #tpu.memory_space<vmem>>, vector<8x4x32xf32>,
    return
  }
  func.func @transform_0(%arg0: i32) -> (i32, i32, i32) {
    %c0_i32 = arith.constant 0 : i32
    %c0_i32_0 = arith.constant 0 : i32
    %c0_i32_1 = arith.constant 0 : i32
    return %arg0, %c0_i32, %c0_i32_0 : i32, i32, i32
  }
  func.func @transform_1(%arg0: i32) -> (i32, i32, i32) {
    %c0_i32 = arith.constant 0 : i32
    %c0_i32_0 = arith.constant 0 : i32
    %c0_i32_1 = arith.constant 0 : i32
    return %arg0, %c0_i32, %c0_i32_0 : i32, i32, i32
  }
}

</mosaic_0001>

<bundles_post_ra>
// kernel: tpu_custom_call.1
= control target key start
LH: loop header
LB: loop body
LE: loop exit
PB: predicated region body
PF: predicated region fallthrough
CT: control target
= control target key end

     0   :  { %6 = vsyncpa [#allocation3], 0  ;;  %s652_s0 = inlined_call_operand.hbm [shape: f32[16,4,32], index: 0, kind: input, shape index: {}]   ;;  %s653_s1 = inlined_call_operand.hbm [shape: f32[16,4,32], index: 1, kind: output, shape index: {}]  }
   0x1   :  { %8 = vsyncpa [#allocation3 + $0x1], 0 }
   0x2   :  { %9 = vsyncpa [#allocation4], 0 }
   0x3   :  { %11 = vsyncpa [#allocation4 + $0x1], 0  ;;  %s473_s6 = smov 0   ;;  %s475_s7 = smov 0  }
   0x4   :  { %s477_s8 = smov 0   ;;  %s479_s9 = smov 0  }
   0x5 LB: > { %s494_s10 = sadd.s32 4294967295, %s455_s9   ;;  %s281_s11 = sadd.s32 4294967294, %s455_s9   ;;  %s455_s9 = sphi %s479_s9, %s668_s9   ;;  %s451_s8 = sphi %s477_s8, %s667_s8   ;;  %s447_s7 = sphi %s475_s7, %s666_s7   ;;  %s443_s6 = sphi %s473_s6, %s665_s6  }
   0x6   : > { %s498_s12 = sadd.s32 1, %s455_s9   ;;  %s24_s13 = sadd.s32 1, %s451_s8 }
   0x7   : > { %s21_s14 = ssub.s32 %s455_s9, %s498_s12  ;;  %p31_p0 = scmp.ne.s32.totalorder %s451_s8, %s447_s7 }
   0x8   : > { %p22_p1 = scmp.eq.s32.totalorder %s21_s14, 0  ;;  %p32_p2 = scmp.eq.s32.totalorder %s455_s9, 0 }
   0x9   : > { %p37_p3 = scmp.ne.s32.totalorder %s447_s7, %s443_s6  ;;  %p38_p4 = scmp.eq.s32.totalorder %s494_s10, 0 }
   0xa   : > { %s510_s15 = scalar_select %p22_p1, %s451_s8, %s24_s13  }
   0xb   : > { %p512_p5 = por %p32_p2, %p31_p0  ;;  %p516_p6 = por %p38_p4, %p37_p3 }
   0xc   : > { %p61_p7 = scmp.eq.s32.totalorder %s494_s10, 1  ;;  %p67_p8 = scmp.eq.s32.totalorder %s281_s11, 1 }
   0xd   : > { %s657_s17 = scalar_select %p516_p6, 1, 0 }
   0xe   : > { %p309_p10 = scmp.lt.s32.totalorder %s455_s9, 2  ;;  %p523_p11 = por %p61_p7, %p31_p0 }
   0xf   : > { %p527_p12 = por %p67_p8, %p37_p3  ;;  %s87_s20 = sand.u32 1, %s451_s8  }
  0x10   : > { %s658_s18 = scalar_select %p523_p11, 1, 0 }
  0x11   : > { %s659_s19 = scalar_select %p527_p12, 1, 0 }
  0x12   : > { %s295_s21 = sshll.u32 %s455_s9, 9  ;;  %s284_s22 = sshll.u32 %s87_s20, 5 }
  0x13   : > { %s536_s25 = scalar_lea.hbm %s652_s0, %s295_s21  ;;  %s91_s26 = scalar_lea.vmem [#allocation2], %s284_s22 }
  0x14   : > { %s98_s27 = sshll.u32 %s91_s26, 4  ;;  %p540_p13 = pnand %p309_p10, %p512_p5  ;;  %s544_s27 = int_to_ptr.vmem [resolvable:$true] %s98_s27 }
  0x15   : > { %s546_s29 = scalar_lea.sflag [#allocation3], %s87_s20  ;;  %s363_s30 = scalar_lea.hbm %s536_s25, 512 }
  0x16   : > { %p364_p0 = scmp.ne.s32.totalorder %s536_s25, %s363_s30  ;;  %p365_p1 = pneg %p540_p13 }
  0x17   : > { %s368_s4 = scalar_lea.hbm %s652_s0, 1024  ;;  %p369_p4 = scmp.lt.s32.totalorder %s536_s25, %s652_s0 }
  0x18   : > { %p366_p2 = pnand %p365_p1, %p364_p0  ;;  %p370_p5 = scmp.lt.s32.totalorder %s368_s4, %s363_s30 }
  0x1a   : > { %p367_p3 = pneg %p366_p2  ;;  %p371_p7 = por %p370_p5, %p369_p4 }
  0x1c   : > { %p372_p8 = pnand %p371_p7, %p367_p3 }
  0x1e   : > { %375 = shalt.err (!%p372_p8)
}
  0x1f   : > { %s376_s13 = scalar_lea.vmem %s544_s27, 512  ;;  %s457_s14 = smov [#allocation2]  }
  0x20   : > { %p377_p10 = scmp.ne.s32.totalorder %s544_s27, %s376_s13  ;;  %s381_s16 = sshll.u32 %s457_s14, 4  ;;  %s382_s16 = int_to_ptr.vmem [resolvable:$false] %s381_s16 }
  0x21   : > { %s383_s20 = scalar_lea.vmem %s382_s16, 1024  ;;  %p384_p2 = scmp.lt.s32.totalorder %s544_s27, %s382_s16 }
  0x22   : > { %p379_p9 = pnand %p377_p10, %p365_p1  ;;  %p385_p12 = scmp.lt.s32.totalorder %s383_s20, %s376_s13 }
  0x24   : > { %p380_p0 = pneg %p379_p9  ;;  %p386_p11 = por %p385_p12, %p384_p2 }
  0x26   : > { %p387_p6 = pnand %p386_p11, %p380_p0 }
  0x28   : > { %390 = shalt.err (!%p387_p6)
}
  0x29   : > { %s458_s21 = smov 64   ;;  %s459_s22 = smov 4  }
  0x2a   : > { %304 = dma.hbm_to_vmem [thread:$0]  (!%p540_p13), %s536_s25, 512, %s544_s27, %s546_s29, %s458_s21, %s458_s21, %s459_s22  }
  0x2b   : > { %p287_p9 = scmp.ge.s32.totalorder %s455_s9, 1  ;;  %p106_p1 = scmp.lt.s32.totalorder %s455_s9, 3 }
  0x2d   : > { %p107_p3 = pnand %p287_p9, %p106_p1 }
  0x2e   : > { %s570_s23 = sand.u32 (!%p107_p3), 1, %s447_s7   ;;  %p661_p6 = scmp.ne.s32.totalorder (!%p107_p3), %s657_s17, 0 }
  0x2f   : > { %110 = sbr.rel (%p107_p3) target bundleno = 92 (0x5c), region = 24  ;;  %s288_s24 = sshll.u32 (!%p107_p3), %s570_s23, 5 }
  0x30   : > { %s113_s26 = scalar_lea.sflag (!%p107_p3), [#allocation3], %s570_s23  ;;  %s116_s30 = scalar_lea.vmem (!%p107_p3), [#allocation2], %s288_s24 }
  0x34   : > { %434 = dma.done.wait (%p661_p6), %s113_s26, 512  }
  0x35   : > { %436 = vsyncadd (%p661_p6), %s113_s26, 4294966784  ;;  %v137_v0 = vld [vmem:[%s116_s30] sm:$0xf]  ;;  %v138_v1 = vld [vmem:[%s116_s30 + $0x4] sm:$0xf]  ;;  %vm185_vm1 = vcmask 257024  }
  0x36   : > { %v139_v2 = vld [vmem:[%s116_s30 + $0x8] sm:$0xf]  ;;  %v161_v3 = vmul.f32 1.442695, %v137_v0  ;;  %v163_v4 = vmul.f32 1.442695, %v138_v1 }
  0x37   : > { %v165_v5 = vmul.f32 1.442695, %v139_v2  ;;  %v140_v6 = vld [vmem:[%s116_s30 + $0xc] sm:$0xf]  ;;  %v141_v7 = vld [vmem:[%s116_s30 + $0x10] sm:$0xf] }
  0x38   : > { %347 = vpow2.f32 %v161_v3  ;;  %v167_v8 = vmul.f32 1.442695, %v140_v6  ;;  %v142_v9 = vld [vmem:[%s116_s30 + $0x14] sm:$0xf]  ;;  %v169_v10 = vmul.f32 1.442695, %v141_v7 }
  0x39   : > { %349 = vpow2.f32 %v163_v4  ;;  %v143_v11 = vld [vmem:[%s116_s30 + $0x18] sm:$0xf]  ;;  %v171_v12 = vmul.f32 1.442695, %v142_v9  ;;  %v144_v13 = vld [vmem:[%s116_s30 + $0x1c] sm:$0xf] }
  0x3a   : > { %351 = vpow2.f32 %v165_v5  ;;  %v173_v14 = vmul.f32 1.442695, %v143_v11  ;;  %v175_v15 = vmul.f32 1.442695, %v144_v13  ;;  %v153_v16 = vadd.f32 1.0, %v137_v0  ;;  %s582_s17 = scalar_lea.vmem [#allocation5], %s288_s24 }
  0x3b   : > { %353 = vpow2.f32 %v167_v8  ;;  %vm145_vm0 = vcmp.gt.f32.partialorder %v137_v0, 0.0  ;;  %v154_v17 = vadd.f32 1.0, %v138_v1  ;;  %vm146_vm2 = vcmp.gt.f32.partialorder %v138_v1, 0.0  ;;  %s208_s25 = sshll.u32 %s582_s17, 4  ;;  %s296_s27 = sshll.u32 %s494_s10, 9  ;;  %s596_s25 = int_to_ptr.vmem [resolvable:$true] %s208_s25 }
  0x3c   : > { %355 = vpow2.f32 %v169_v10  ;;  %v155_v18 = vadd.f32 1.0, %v139_v2  ;;  %vm147_vm3 = vcmp.gt.f32.partialorder %v139_v2, 0.0  ;;  %v156_v20 = vadd.f32 1.0, %v140_v6  ;;  %s603_s29 = scalar_lea.hbm %s653_s1, %s296_s27  ;;  %s195_s2 = scalar_lea.sflag [#allocation4], %s570_s23 }
  0x3d   : > { %357 = vpow2.f32 %v171_v12  ;;  %vm148_vm4 = vcmp.gt.f32.partialorder %v140_v6, 0.0  ;;  %v157_v23 = vadd.f32 1.0, %v141_v7  ;;  %vm149_vm5 = vcmp.gt.f32.partialorder %v141_v7, 0.0  ;;  %s391_s3 = scalar_lea.vmem %s596_s25, 512  ;;  %p662_p12 = scmp.ne.s32.totalorder %s658_s18, 0 }
  0x3e   : > { %359 = vpow2.f32 %v173_v14  ;;  %v158_v26 = vadd.f32 1.0, %v142_v9  ;;  %vm150_vm6 = vcmp.gt.f32.partialorder %v142_v9, 0.0  ;;  %v159_v29 = vadd.f32 1.0, %v143_v11  ;;  %p392_p11 = scmp.ne.s32.totalorder %s596_s25, %s391_s3  ;;  %s460_s4 = smov [#allocation5]  }
  0x3f   : > { %361 = vpow2.f32 %v175_v15  ;;  %vm151_vm7 = vcmp.gt.f32.partialorder %v143_v11, 0.0  ;;  %v160_v32 = vadd.f32 1.0, %v144_v13  ;;  %vm152_vm8 = vcmp.gt.f32.partialorder %v144_v13, 0.0  ;;  %s395_s5 = sshll.u32 %s460_s4, 4  ;;  %s396_s5 = int_to_ptr.vmem [resolvable:$false] %s395_s5 }
  0x40   : > { %p393_p13 = pnand %p392_p11, %p662_p12  ;;  %s397_s11 = scalar_lea.vmem %s396_s5, 1024 }
  0x41   : > { %p398_p5 = scmp.lt.s32.totalorder %s596_s25, %s396_s5  ;;  %p399_p7 = scmp.lt.s32.totalorder %s397_s11, %s391_s3 }
  0x42   : > { %p394_p4 = pneg %p393_p13 }
  0x43   : > { %p400_p8 = por %p399_p7, %p398_p5 }
  0x45   : > { %v348_v19 = vpop.eup %347  ;;  %p401_p10 = pnand %p400_p8, %p394_p4 }
  0x46   : > { %v350_v21 = vpop.eup %349  ;;  %v177_v22 = vsel %vm145_vm0, %v153_v16, %v348_v19 }
  0x47   : > { %v352_v24 = vpop.eup %351  ;;  %186 = vst.msk [vmem:[%s582_s17] sm:$0xf] %vm185_vm1, %v177_v22  ;;  %v178_v25 = vsel %vm146_vm2, %v154_v17, %v350_v21 }
  0x48   : > { %v354_v27 = vpop.eup %353  ;;  %187 = vst.msk [vmem:[%s582_s17 + $0x4] sm:$0xf] %vm185_vm1, %v178_v25  ;;  %v179_v28 = vsel %vm147_vm3, %v155_v18, %v352_v24 }
  0x49   : > { %v356_v30 = vpop.eup %355  ;;  %188 = vst.msk [vmem:[%s582_s17 + $0x8] sm:$0xf] %vm185_vm1, %v179_v28  ;;  %v180_v31 = vsel %vm148_vm4, %v156_v20, %v354_v27 }
  0x4a   : > { %v358_v33 = vpop.eup %357  ;;  %189 = vst.msk [vmem:[%s582_s17 + $0xc] sm:$0xf] %vm185_vm1, %v180_v31  ;;  %v181_v34 = vsel %vm149_vm5, %v157_v23, %v356_v30 }
  0x4b   : > { %v360_v35 = vpop.eup %359  ;;  %190 = vst.msk [vmem:[%s582_s17 + $0x10] sm:$0xf] %vm185_vm1, %v181_v34  ;;  %v182_v36 = vsel %vm150_vm6, %v158_v26, %v358_v33 }
  0x4c   : > { %v362_v37 = vpop.eup %361  ;;  %191 = vst.msk [vmem:[%s582_s17 + $0x14] sm:$0xf] %vm185_vm1, %v182_v36  ;;  %v183_v38 = vsel %vm151_vm7, %v159_v29, %v360_v35 }
  0x4d   : > { %192 = vst.msk [vmem:[%s582_s17 + $0x18] sm:$0xf] %vm185_vm1, %v183_v38  ;;  %v184_v39 = vsel %vm152_vm8, %v160_v32, %v362_v37 }
  0x4e   : > { %193 = vst.msk [vmem:[%s582_s17 + $0x1c] sm:$0xf] %vm185_vm1, %v184_v39 }
  0x4f   : > { %404 = shalt.err (!%p401_p10)
}
  0x50   : > { %s405_s13 = scalar_lea.hbm %s603_s29, 512  ;;  %s409_s20 = scalar_lea.hbm %s653_s1, 1024 }
  0x51   : > { %p406_p0 = scmp.ne.s32.totalorder %s603_s29, %s405_s13  ;;  %p410_p1 = scmp.lt.s32.totalorder %s603_s29, %s653_s1 }
  0x52   : > { %p411_p3 = scmp.lt.s32.totalorder %s409_s20, %s405_s13 }
  0x53   : > { %p407_p2 = pnand %p406_p0, %p662_p12 }
  0x54   : > { %p412_p6 = por %p411_p3, %p410_p1 }
  0x55   : > { %p408_p9 = pneg %p407_p2 }
  0x57   : > { %p413_p11 = pnand %p412_p6, %p408_p9 }
  0x59   : > { %416 = shalt.err (!%p413_p11)
}
  0x5a   : > { %s461_s24 = smov 64   ;;  %s462_s26 = smov 4  }
  0x5b   : > { %299 = dma.vmem_to_hbm [thread:$0]  (%p662_p12), %s596_s25, 512, %s603_s29, %s195_s2, %s461_s24, %s461_s24, %s462_s26  }
  0x5c PF: > { %s223_s30 = sand.u32 1, %s443_s6   ;;  %p663_p13 = scmp.ne.s32.totalorder %s659_s19, 0 }
  0x5d   : > { %p664_p4 = scmp.ge.s32.totalorder %s455_s9, 2  ;;  %s224_s17 = scalar_lea.sflag [#allocation4], %s223_s30 }
  0x5f   : > { %p306_p5 = pnand %p664_p4, %p663_p13 }
  0x61   : > { %p307_p7 = pneg %p306_p5 }
  0x63   : > { %438 = dma.done.wait (%p307_p7), %s224_s17, 512  }
  0x64   : > { %440 = vsyncadd (%p307_p7), %s224_s17, 4294966784  ;;  %p14_p8 = scmp.ge.s32.totalorder %s498_s12, 4   ;;  %s665_s6 = smov %s447_s7 }
  0x65   : > { %s666_s7 = smov %s451_s8  ;;  %s667_s8 = smov %s510_s15 }
  0x66   : > { %s668_s9 = smov %s498_s12  ;;  %16 = sbr.rel (!%p14_p8) target bundleno = 5 (0x5), region = 69 }
  0x6b   :  { %229 = vsyncpa [#allocation3], 1 }
  0x6c   :  { %231 = vsyncpa [#allocation3 + $0x1], 1 }
  0x6d   :  { %232 = vsyncpa [#allocation4], 1 }
  0x6e   :  { %234 = vsyncpa [#allocation4 + $0x1], 1 }

</bundles_post_ra>
